<compile_context>
chip_gen: v6e
topology: v6e:2x2x1
jax: 0.10.0
libtpu: 0.0.40
codegen_flags: <defaults>
</compile_context>

<pallas_src>
import jax
import jax.numpy as jnp
import numpy as np
from jax.experimental import pallas as pl
from jax.experimental.pallas import tpu as pltpu


def _rope_kernel(cs_ref, x_ref, o_ref):
    """cs_ref: (tile_s, half) f32;  x_ref / o_ref: (B, tile_s, D)."""
    half = cs_ref.shape[-1]
    cs = cs_ref[...][None, :, :]                       # (1, tS, half), f32
    # out = cat(x2, -x1) * cat(cs, cs)  ==  cat(x2 * cs, x1 * (-cs))
    x2 = x_ref[:, :, half:].astype(jnp.float32)        # (B, tS, half)
    x1 = x_ref[:, :, :half].astype(jnp.float32)        # (B, tS, half)
    o_ref[:, :, :half] = (x2 * cs).astype(o_ref.dtype)
    o_ref[:, :, half:] = (x1 * (-cs)).astype(o_ref.dtype)


def _pick_tile_s(S, B, D, itemsize):
    """Seq-tile so one x block is ~2 MiB (double-buffered in+out+table stays
    well under the scoped-VMEM defaults on v5e/v6e/v7x)."""
    target_bytes = 2 * 1024 * 1024
    rows = target_bytes // max(1, B * D * itemsize)
    rows = int(max(8, min(rows, 1024)))
    if rows >= 32:
        rows -= rows % 32        # friendly to f32/bf16/int8 sublane packing
    else:
        rows -= rows % 8
    if S <= rows:
        return S                 # whole sequence in a single block
    return rows


def ntk_scaling_rotary_embedding(x, inv_freq, *, scaling_factor=1.0, tile_s=None):
    """x: [B, S, D] (D even), inv_freq: [D//2]. Returns [B, S, D]."""
    B, S, D = x.shape
    assert D % 2 == 0, "rotary dim must be even"
    half = D // 2
    assert inv_freq.shape == (half,)

    if tile_s is None:
        tile_s = _pick_tile_s(S, B, D, jnp.dtype(x.dtype).itemsize)
    assert tile_s == S or tile_s % 8 == 0

    # Pad the sequence so every grid step gets a full tile (sliced off below).
    n_steps = pl.cdiv(S, tile_s)
    S_pad = n_steps * tile_s
    x_in = x if S_pad == S else jnp.pad(x, ((0, 0), (0, S_pad - S), (0, 0)))

    # Tiny host/XLA-side table: scaling factor and cos-sin identity folded in.
    # f32 positions are exact for S < 2**24.
    t = jnp.arange(S_pad, dtype=jnp.float32)
    ang = (t[:, None] * inv_freq.astype(jnp.float32)[None, :]) * float(scaling_factor)
    cs = jnp.cos(ang) - jnp.sin(ang)                   # (S_pad, half), f32

    out = pl.pallas_call(
        _rope_kernel,
        out_shape=jax.ShapeDtypeStruct((B, S_pad, D), x.dtype),
        grid_spec=pltpu.PrefetchScalarGridSpec(
            num_scalar_prefetch=0,
            grid=(n_steps,),
            in_specs=[
                pl.BlockSpec((tile_s, half), lambda i: (i, 0)),     # cs table tile
                pl.BlockSpec((B, tile_s, D), lambda i: (0, i, 0)),  # x seq tile
            ],
            out_specs=pl.BlockSpec((B, tile_s, D), lambda i: (0, i, 0)),
        ),
        compiler_params=pltpu.CompilerParams(
            dimension_semantics=("parallel",),
            # Raise v5e's 16 MiB default; still <= defaults on v6e/v7x.
            vmem_limit_bytes=32 * 1024 * 1024,
        ),
    )(cs, x_in)

    return out if S_pad == S else out[:, :S, :]


def _reference(x, inv_freq, scaling_factor):
    """Pure-JAX transcription of the PyTorch forward."""
    B, S, D = x.shape
    half = D // 2
    t = jnp.arange(S, dtype=jnp.float32)
    freqs = t[:, None] * inv_freq[None, :]
    emb = jnp.concatenate([freqs, freqs], axis=-1) * scaling_factor   # (S, D)
    cos = jnp.cos(emb)[None, :, :]
    sin = jnp.sin(emb)[None, :, :]
    x1, x2 = x[..., :half], x[..., half:]
    rot = jnp.concatenate([x2, -x1], axis=-1)
    rot_rev = jnp.concatenate([-x2, x1], axis=-1)
    return rot * cos + rot_rev * sin


if __name__ == "__main__":
    # Deterministic parameter setup (mirrors the module __init__).
    dim = 32
    base = 10000.0
    scaling_factor = 0.5
    inv_freq = 1.0 / (base ** (jnp.arange(0, dim, 2, dtype=jnp.float32) / dim))

    # Small deterministic input: batch=2, seq=16, dim=32.
    key = jax.random.PRNGKey(0)
    x = jax.random.normal(key, (2, 16, dim), dtype=jnp.float32)

    out = ntk_scaling_rotary_embedding(x, inv_freq, scaling_factor=scaling_factor)
    out = jax.block_until_ready(out)

    ref = _reference(x, inv_freq, scaling_factor)
    np.testing.assert_allclose(np.asarray(out), np.asarray(ref),
                               rtol=1e-5, atol=1e-5)
    print("KERNEL_OK")
</pallas_src>

<mosaic_0001>
module attributes {stable_mosaic.version = 11 : i64} {
  func.func @_rope_kernel(%arg0: i32, %arg1: memref<16x16xf32, #tpu.memory_space<vmem>>, %arg2: memref<2x16x32xf32, #tpu.memory_space<vmem>>, %arg3: memref<2x16x32xf32, #tpu.memory_space<vmem>>) attributes {dimension_semantics = [#tpu.dimension_semantics<parallel>], iteration_bounds = array<i64: 1>, scalar_prefetch = 0 : i64, scratch_operands = 0 : i64, tpu.core_type = #tpu.core_type<tc>, window_params = [{transform_indices = @transform_0, window_bounds = array<i64: 16, 16>}, {transform_indices = @transform_1, window_bounds = array<i64: 2, 16, 32>}, {transform_indices = @transform_2, window_bounds = array<i64: 2, 16, 32>}]} {
    %c0 = arith.constant 0 : index
    %c0_0 = arith.constant 0 : index
    %0 = vector.load %arg1[%c0, %c0_0] : memref<16x16xf32, #tpu.memory_space<vmem>>, vector<16x16xf32>
    %1 = vector.shape_cast %0 : vector<16x16xf32> to vector<1x16x16xf32>
    %c0_1 = arith.constant 0 : index
    %c0_2 = arith.constant 0 : index
    %c16 = arith.constant 16 : index
    %2 = vector.load %arg2[%c0_1, %c0_2, %c16] : memref<2x16x32xf32, #tpu.memory_space<vmem>>, vector<2x16x16xf32>
    %c0_3 = arith.constant 0 : index
    %c0_4 = arith.constant 0 : index
    %c0_5 = arith.constant 0 : index
    %3 = vector.load %arg2[%c0_3, %c0_4, %c0_5] : memref<2x16x32xf32, #tpu.memory_space<vmem>>, vector<2x16x16xf32>
    %4 = vector.broadcast %1 : vector<1x16x16xf32> to vector<2x16x16xf32>
    %5 = arith.mulf %2, %4 : vector<2x16x16xf32>
    %c0_6 = arith.constant 0 : index
    %c0_7 = arith.constant 0 : index
    %c0_8 = arith.constant 0 : index
    %6 = vector.load %arg3[%c0_6, %c0_7, %c0_8] : memref<2x16x32xf32, #tpu.memory_space<vmem>>, vector<2x16x16xf32>
    tpu.vector_store %arg3[%c0_6, %c0_7, %c0_8], %5 {strides = array<i32>} : memref<2x16x32xf32, #tpu.memory_space<vmem>>, vector<2x16x16xf32>,
    %cst = arith.constant 0.000000e+00 : f32
    %7 = vector.broadcast %cst : f32 to vector<1x16x16xf32>
    %8 = arith.subf %7, %1 : vector<1x16x16xf32>
    %9 = vector.broadcast %8 : vector<1x16x16xf32> to vector<2x16x16xf32>
    %10 = arith.mulf %3, %9 : vector<2x16x16xf32>
    %c0_9 = arith.constant 0 : index
    %c0_10 = arith.constant 0 : index
    %c16_11 = arith.constant 16 : index
    %11 = vector.load %arg3[%c0_9, %c0_10, %c16_11] : memref<2x16x32xf32, #tpu.memory_space<vmem>>, vector<2x16x16xf32>
    tpu.vector_store %arg3[%c0_9, %c0_10, %c16_11], %10 {strides = array<i32>} : memref<2x16x32xf32, #tpu.memory_space<vmem>>, vector<2x16x16xf32>,
    return
  }
  func.func @transform_0(%arg0: i32) -> (i32, i32) {
    %c0_i32 = arith.constant 0 : i32
    %c0_i32_0 = arith.constant 0 : i32
    return %arg0, %c0_i32 : i32, i32
  }
  func.func @transform_1(%arg0: i32) -> (i32, i32, i32) {
    %c0_i32 = arith.constant 0 : i32
    %c0_i32_0 = arith.constant 0 : i32
    %c0_i32_1 = arith.constant 0 : i32
    return %c0_i32, %arg0, %c0_i32_0 : i32, i32, i32
  }
  func.func @transform_2(%arg0: i32) -> (i32, i32, i32) {
    %c0_i32 = arith.constant 0 : i32
    %c0_i32_0 = arith.constant 0 : i32
    %c0_i32_1 = arith.constant 0 : i32
    return %c0_i32, %arg0, %c0_i32_0 : i32, i32, i32
  }
}

</mosaic_0001>

<bundles_post_ra>
// kernel: tpu_custom_call.1
= control target key start
LH: loop header
LB: loop body
LE: loop exit
PB: predicated region body
PF: predicated region fallthrough
CT: control target
= control target key end

     0   :  { %7 = vsyncpa [#allocation3], 0  ;;  %s241_s0 = inlined_call_operand.hbm [shape: f32[16,16], index: 0, kind: input, shape index: {}]   ;;  %s242_s1 = inlined_call_operand.hbm [shape: f32[2,16,32], index: 1, kind: input, shape index: {}]   ;;  %s243_s2 = inlined_call_operand.hbm [shape: f32[2,16,32], index: 2, kind: output, shape index: {}]  }
   0x1   :  { %8 = vsyncpa [#allocation6], 0 }
   0x2   :  { %9 = vsyncpa [#allocation4], 0  ;;  %s197_s9 = smov [#allocation2]  }
   0x3   :  { %s15_s10 = sshll.u32 %s197_s9, 4  ;;  %s16_s10 = int_to_ptr.vmem [resolvable:$true] %s15_s10 }
   0x4   :  { %s139_s11 = scalar_lea.vmem %s16_s10, 256  ;;  %p144_p1 = scmp.lt.s32.totalorder %s16_s10, %s16_s10 }
   0x5   :  { %p140_p0 = scmp.ne.s32.totalorder %s16_s10, %s139_s11  ;;  %p145_p2 = scmp.lt.s32.totalorder %s139_s11, %s139_s11 }
   0x7   :  { %p146_p3 = por %p145_p2, %p144_p1 }
   0x9   :  { %p147_p4 = pnand %p146_p3, %p140_p0 }
   0xb   :  { %150 = shalt.err (!%p147_p4)
}
   0xc   :  { %s198_s12 = smov 128   ;;  %s199_s13 = smov 8  }
   0xd   :  { %21 = dma.hbm_to_vmem [thread:$0]  %s241_s0, 256, %s16_s10, [#allocation3], %s198_s12, %s198_s12, %s199_s13  }
   0xe   :  { %s200_s16 = smov [#allocation5]  }
   0xf   :  { %s27_s17 = sshll.u32 %s200_s16, 4  ;;  %s28_s17 = int_to_ptr.vmem [resolvable:$true] %s27_s17 }
  0x10   :  { %s159_s18 = scalar_lea.vmem %s28_s17, 512  ;;  %p164_p6 = scmp.lt.s32.totalorder %s28_s17, %s28_s17 }
  0x11   :  { %p160_p5 = scmp.ne.s32.totalorder %s28_s17, %s159_s18  ;;  %p165_p7 = scmp.lt.s32.totalorder %s159_s18, %s159_s18 }
  0x13   :  { %p166_p8 = por %p165_p7, %p164_p6 }
  0x15   :  { %p167_p9 = pnand %p166_p8, %p160_p5 }
  0x17   :  { %170 = shalt.err (!%p167_p9)
}
  0x18   :  { %33 = dma.hbm_to_vmem [thread:$0]  %s242_s1, 512, %s28_s17, [#allocation6], %s198_s12, %s198_s12, %s199_s13  }
  0x19   :  { %191 = dma.done.wait [#allocation3], 256  }
  0x1a   :  { %192 = vsyncadd [#allocation3], 4294967040 }
  0x1b   :  { %193 = dma.done.wait [#allocation6], 512  }
  0x1c   :  { %194 = vsyncadd [#allocation6], 4294966784  ;;  %v40_v0 = vld [vmem:[#allocation2] sm:$0xff]  ;;  %v41_v1 = vld [vmem:[#allocation2 + $0x8] sm:$0xff]  ;;  %s201_s0 = smov 16   ;;  %s202_s1 = smov 112  }
  0x1d   :  { %48 = vrot.lane.b32.xlu0 %v40_v0, %s201_s0  ;;  %v79_v2 = vsub.f32 0.0, %v40_v0  ;;  %v80_v3 = vsub.f32 0.0, %v41_v1  ;;  %v43_v4 = vld [vmem:[#allocation5 + $0x8] sm:$0xff]  ;;  %v42_v5 = vld [vmem:[#allocation5] sm:$0xff]  ;;  %v44_v8 = vld [vmem:[#allocation5 + $0x10] sm:$0xff]  ;;  %vm74_vm0 = vcmask 130048  }
  0x1e   :  { %v45_v15 = vld [vmem:[#allocation5 + $0x18] sm:$0xff]  ;;  %vm101_vm1 = vcmask 261248   ;;  %s203_s21 = smov [#allocation7]  }
  0x1f   :  { %v82_v6 = vmul.f32 %v80_v3, %v43_v4  ;;  %v81_v7 = vmul.f32 %v79_v2, %v42_v5  ;;  %v83_v12 = vmul.f32 %v79_v2, %v44_v8  ;;  %v84_v17 = vmul.f32 %v80_v3, %v45_v15  ;;  %s111_s22 = sshll.u32 %s203_s21, 4  ;;  %s112_s22 = int_to_ptr.vmem [resolvable:$true] %s111_s22 }
  0x20   :  { %s171_s23 = scalar_lea.vmem %s112_s22, 512  ;;  %p176_p11 = scmp.lt.s32.totalorder %s112_s22, %s112_s22 }
  0x21   :  { %50 = vrot.lane.b32.xlu0 %v41_v1, %s201_s0  ;;  %91 = vrot.lane.b32.xlu1 %v82_v6, %s201_s0  ;;  %p172_p10 = scmp.ne.s32.totalorder %s112_s22, %s171_s23  ;;  %p177_p12 = scmp.lt.s32.totalorder %s171_s23, %s171_s23 }
  0x23   :  { %p178_p13 = por %p177_p12, %p176_p11 }
  0x25   :  { %89 = vrot.lane.b32.xlu0 %v81_v7, %s201_s0  ;;  %p179_p0 = pnand %p178_p13, %p172_p10 }
  0x8f   :  { %v49_v9 = vpop.permute.xlu0 %48 }
  0x90   :  { %v54_v10 = vmul.f32 %v49_v9, %v42_v5  ;;  %v56_v11 = vmul.f32 %v49_v9, %v44_v8 }
  0x92   :  { %62 = vrot.lane.b32.xlu1 %v54_v10, %s202_s1  ;;  %66 = vrot.lane.b32.xlu0 %v56_v11, %s202_s1 }
  0x93   :  { %v51_v13 = vpop.permute.xlu0 %50  ;;  %v92_v18 = vpop.permute.xlu1 %91 }
  0x94   :  { %v55_v14 = vmul.f32 %v51_v13, %v43_v4  ;;  %v57_v16 = vmul.f32 %v51_v13, %v45_v15 }
  0x96   :  { %64 = vrot.lane.b32.xlu1 %v55_v14, %s202_s1  ;;  %93 = vrot.lane.b32.xlu0 %v83_v12, %s201_s0 }
  0x97   :  { %v90_v19 = vpop.permute.xlu0 %89 }
  0x9a   :  { %68 = vrot.lane.b32.xlu1 %v57_v16, %s202_s1 }
  0x9e   :  { %95 = vrot.lane.b32.xlu1 %v84_v17, %s201_s0 }
 0x104   :  { %v63_v20 = vpop.permute.xlu1 %62  ;;  %v67_v21 = vpop.permute.xlu0 %66 }
 0x105   :  { %75 = vst.msk [vmem:[#allocation7] sm:$0xff] %vm74_vm0, %v63_v20  ;;  %77 = vst.msk [vmem:[#allocation7 + $0x10] sm:$0xff] %vm74_vm0, %v67_v21 }
 0x106   :  { %102 = vst.msk [vmem:[#allocation7] sm:$0xff] %vm101_vm1, %v90_v19 }
 0x108   :  { %v65_v22 = vpop.permute.xlu1 %64  ;;  %v94_v23 = vpop.permute.xlu0 %93 }
 0x109   :  { %76 = vst.msk [vmem:[#allocation7 + $0x8] sm:$0xff] %vm74_vm0, %v65_v22 }
 0x10a   :  { %104 = vst.msk [vmem:[#allocation7 + $0x10] sm:$0xff] %vm101_vm1, %v94_v23  ;;  %103 = vst.msk [vmem:[#allocation7 + $0x8] sm:$0xff] %vm101_vm1, %v92_v18 }
 0x10c   :  { %v69_v24 = vpop.permute.xlu1 %68 }
 0x10d   :  { %78 = vst.msk [vmem:[#allocation7 + $0x18] sm:$0xff] %vm74_vm0, %v69_v24 }
 0x110   :  { %v96_v25 = vpop.permute.xlu1 %95 }
 0x111   :  { %105 = vst.msk [vmem:[#allocation7 + $0x18] sm:$0xff] %vm101_vm1, %v96_v25 }
 0x112   :  { %182 = shalt.err (!%p179_p0)
}
 0x113   :  { %117 = dma.vmem_to_hbm [thread:$0]  %s112_s22, 512, %s243_s2, [#allocation4], %s198_s12, %s198_s12, %s199_s13  }
 0x114   :  { %195 = dma.done.wait [#allocation4], 512  }
 0x115   :  { %196 = vsyncadd [#allocation4], 4294966784 }
 0x116   :  { %121 = vsyncpa [#allocation3], 1 }
 0x117   :  { %122 = vsyncpa [#allocation6], 1 }
 0x118   :  { %123 = vsyncpa [#allocation4], 1 }

</bundles_post_ra>
